<compile_context>
chip_gen: v6e
topology: v6e:2x2x1
jax: 0.10.0
libtpu: 0.0.40
codegen_flags: <defaults>
</compile_context>

<pallas_src>
import functools
import math

import jax
import jax.numpy as jnp
from jax.experimental import pallas as pl
from jax.experimental.pallas import tpu as pltpu


def _round_up(v, m):
    return ((v + m - 1) // m) * m


def _fused_mlp_kernel(alpha_ref, x_ref, *refs, n_layers):
    """Fused MLP over one row tile.

    alpha_ref : (1,) f32 in SMEM                 (PReLU slope)
    x_ref     : (tm, in_feats)                   row tile of the input
    refs      : w0, b0, w1, b1, ..., w_{L-1}, b_{L-1}, o_ref
                w_l : (K_l, N_l_pad)  full padded weight, untiled VMEM resident
                b_l : (1, N_l_pad)    untiled VMEM resident
                o_ref: (tm, N_last_pad)
    All intermediates stay in VMEM/vregs; the layer loop is statically unrolled.
    """
    o_ref = refs[-1]
    param_refs = refs[:-1]
    alpha = alpha_ref[0]

    h = x_ref[...]
    for layer_id in range(n_layers):
        w_ref = param_refs[2 * layer_id]
        b_ref = param_refs[2 * layer_id + 1]
        # MXU matmul, f32 accumulation regardless of input dtype.
        y = jnp.dot(h.astype(w_ref.dtype), w_ref[...],
                    preferred_element_type=jnp.float32)
        y = y + b_ref[...].astype(jnp.float32)
        if layer_id < n_layers - 1:
            # PReLU with single shared alpha; dropout == identity (eval mode).
            y = jnp.where(y > 0, y, alpha * y)
        h = y
    o_ref[...] = h.astype(o_ref.dtype)


def prepare_params(params, compute_dtype=jnp.float32):
    """Pad / cast the layer parameters ONCE (hoisted out of the hot path).

    params : list of (w_t [K, N], b [N]) per layer (weights already [in, out]).
    Returns (flat_params = [w0, b0, w1, b1, ...], dims, pdims) where hidden and
    output feature dims are zero-padded to multiples of 128 (lane dense) and
    the input feature dim is left unpadded (full-array-dim blocks are legal).
    Zero weight rows/cols keep the padded lanes exactly zero through every
    layer, so slicing them off in the wrapper is exact.
    """
    dims = [params[0][0].shape[0]] + [w_t.shape[1] for (w_t, _) in params]
    pdims = [dims[0]] + [_round_up(d, 128) for d in dims[1:]]

    flat_params = []
    for li, (w_t, b) in enumerate(params):
        k_in, k_out = w_t.shape
        w_p = jnp.zeros((pdims[li], pdims[li + 1]), compute_dtype)
        w_p = w_p.at[:k_in, :k_out].set(w_t.astype(compute_dtype))
        b_p = jnp.zeros((1, pdims[li + 1]), jnp.float32)
        b_p = b_p.at[0, :k_out].set(b.astype(jnp.float32))
        flat_params += [w_p, b_p]
    return flat_params, dims, pdims


def feedforward_net(x, flat_params, alpha, dims, pdims, *,
                    tm=256, out_dtype=jnp.float32):
    """Forward pass of FeedForwardNet as one fused Pallas call.

    x           : [M, in_feats] (f32 or bf16; cast to weight dtype in-kernel)
    flat_params : pre-padded [w0, b0, ...] from prepare_params()
    alpha       : scalar PReLU slope
    """
    M, in_feats = x.shape
    assert in_feats == dims[0]
    n_layers = len(dims) - 1
    out_feats, out_pad = dims[-1], pdims[-1]

    # --- tile-size selection ------------------------------------------------
    tm = max(8, tm)
    # Keep both v7x TensorCores busy: make sure the parallel row grid has at
    # least 2 tiles when there are enough rows.
    if M > 128:
        while tm > 128 and pl.cdiv(M, tm) < 2:
            tm //= 2
    # Never use a tile taller than the (8-rounded) row count.
    tm = min(tm, _round_up(M, 8))

    # --- VMEM budget (v7x: 64 MiB physical, be conservative) ----------------
    w_bytes = sum(int(p.size) * p.dtype.itemsize for p in flat_params)

    def _stream_bytes(t):
        # double-buffered x tile + double-buffered out tile + f32 intermediates
        return (2 * t * in_feats * x.dtype.itemsize
                + 2 * t * out_pad * jnp.dtype(out_dtype).itemsize
                + 2 * t * max(pdims) * 4)

    budget = 48 << 20
    while tm > 128 and w_bytes + _stream_bytes(tm) > budget:
        tm //= 2
    vmem_limit = int(min(max(2 * (w_bytes + _stream_bytes(tm)), 16 << 20),
                         64 << 20))

    # --- pallas_call ---------------------------------------------------------
    grid = (pl.cdiv(M, tm),)

    in_specs = [
        pl.BlockSpec(memory_space=pltpu.MemorySpace.SMEM),   # alpha (scalar)
        pl.BlockSpec((tm, in_feats), lambda i: (i, 0)),      # x row tile
    ]
    # Untiled, single-buffered VMEM residents (no pipeline double-buffering).
    in_specs += [pl.BlockSpec(memory_space=pltpu.MemorySpace.VMEM)
                 ] * (2 * n_layers)

    kernel = functools.partial(_fused_mlp_kernel, n_layers=n_layers)

    alpha1 = jnp.asarray(alpha, jnp.float32).reshape(1)

    out_p = pl.pallas_call(
        kernel,
        out_shape=jax.ShapeDtypeStruct((M, out_pad), out_dtype),
        grid=grid,
        in_specs=in_specs,
        out_specs=pl.BlockSpec((tm, out_pad), lambda i: (i, 0)),
        compiler_params=pltpu.CompilerParams(
            dimension_semantics=("parallel",),
            vmem_limit_bytes=vmem_limit),
    )(alpha1, x, *flat_params)

    return out_p[:, :out_feats]


def init_feedforward_params(key, in_feats, hidden, out_feats, n_layers):
    """Deterministic init matching FeedForwardNet.reset_parameters.

    Each layer: xavier_uniform with gain = calculate_gain('relu') = sqrt(2),
    bias = 0.  PReLU alpha = 0.25 (PyTorch default).  Weights are returned
    already transposed to [in, out].
    """
    gain = math.sqrt(2.0)
    if n_layers == 1:
        shapes = [(in_feats, out_feats)]
    else:
        shapes = [(in_feats, hidden)]
        shapes += [(hidden, hidden)] * (n_layers - 2)
        shapes += [(hidden, out_feats)]

    params = []
    for (fan_in, fan_out) in shapes:
        key, sub = jax.random.split(key)
        bound = gain * math.sqrt(6.0 / (fan_in + fan_out))
        w_t = jax.random.uniform(sub, (fan_in, fan_out), jnp.float32,
                                 minval=-bound, maxval=bound)
        b = jnp.zeros((fan_out,), jnp.float32)
        params.append((w_t, b))
    alpha = jnp.float32(0.25)
    return params, alpha


def _reference(x, params, alpha):
    n_layers = len(params)
    h = x
    for layer_id, (w_t, b) in enumerate(params):
        h = h @ w_t + b
        if layer_id < n_layers - 1:
            h = jnp.where(h > 0, h, alpha * h)
    return h


if __name__ == "__main__":
    # Small shapes consistent with the module (rows = nodes, ragged on purpose:
    # M is not a multiple of the row tile, so the partial edge block is tested).
    M = 200
    in_feats = 48
    hidden = 64
    out_feats = 24
    n_layers = 3
    dropout_p = 0.5  # unused at inference (identity)

    key = jax.random.PRNGKey(0)
    key, kx = jax.random.split(key)
    x = jax.random.normal(kx, (M, in_feats), jnp.float32)

    params, alpha = init_feedforward_params(
        key, in_feats, hidden, out_feats, n_layers)

    ref = _reference(x, params, alpha)

    # f32 path: tight correctness check.
    flat_f32, dims, pdims = prepare_params(params, jnp.float32)
    out = feedforward_net(x, flat_f32, alpha, dims, pdims, tm=256)
    out = jax.block_until_ready(out)
    assert out.shape == (M, out_feats)
    assert jnp.allclose(out, ref, atol=1e-3, rtol=1e-3)

    # bf16-streamed path (recommended on v5e/v6e/v7x): x and weights in bf16,
    # f32 MXU accumulation + f32 bias/activations. Loose tolerance.
    flat_bf16, dims_b, pdims_b = prepare_params(params, jnp.bfloat16)
    out_bf16 = feedforward_net(x.astype(jnp.bfloat16), flat_bf16, alpha,
                               dims_b, pdims_b, tm=256)
    out_bf16 = jax.block_until_ready(out_bf16)
    assert out_bf16.shape == (M, out_feats)
    assert jnp.allclose(out_bf16, ref, atol=0.25, rtol=0.1)

    print("KERNEL_OK")
</pallas_src>

<mosaic_0001>
module attributes {stable_mosaic.version = 11 : i64} {
  func.func @_fused_mlp_kernel(%arg0: i32, %arg1: memref<1xf32, #tpu.memory_space<smem>>, %arg2: memref<128x48xf32, #tpu.memory_space<vmem>>, %arg3: memref<48x128xf32, #tpu.memory_space<vmem>>, %arg4: memref<1x128xf32, #tpu.memory_space<vmem>>, %arg5: memref<128x128xf32, #tpu.memory_space<vmem>>, %arg6: memref<1x128xf32, #tpu.memory_space<vmem>>, %arg7: memref<128x128xf32, #tpu.memory_space<vmem>>, %arg8: memref<1x128xf32, #tpu.memory_space<vmem>>, %arg9: memref<128x128xf32, #tpu.memory_space<vmem>>) attributes {dimension_semantics = [#tpu.dimension_semantics<parallel>], iteration_bounds = array<i64: 2>, scalar_prefetch = 0 : i64, scratch_operands = 0 : i64, tpu.core_type = #tpu.core_type<tc>, window_params = [{transform_indices = @transform_0, window_bounds = array<i64: 1>}, {transform_indices = @transform_1, window_bounds = array<i64: 128, 48>}, {pipeline_mode = #tpu.pipeline_mode<synchronous>, transform_indices = @transform_2, window_bounds = array<i64: 48, 128>}, {pipeline_mode = #tpu.pipeline_mode<synchronous>, transform_indices = @transform_3, window_bounds = array<i64: 1, 128>}, {pipeline_mode = #tpu.pipeline_mode<synchronous>, transform_indices = @transform_4, window_bounds = array<i64: 128, 128>}, {pipeline_mode = #tpu.pipeline_mode<synchronous>, transform_indices = @transform_5, window_bounds = array<i64: 1, 128>}, {pipeline_mode = #tpu.pipeline_mode<synchronous>, transform_indices = @transform_6, window_bounds = array<i64: 128, 128>}, {pipeline_mode = #tpu.pipeline_mode<synchronous>, transform_indices = @transform_7, window_bounds = array<i64: 1, 128>}, {transform_indices = @transform_8, window_bounds = array<i64: 128, 128>}]} {
    %c0 = arith.constant 0 : index
    %0 = memref.load %arg1[%c0] : memref<1xf32, #tpu.memory_space<smem>>
    %c0_0 = arith.constant 0 : index
    %c0_1 = arith.constant 0 : index
    %1 = vector.load %arg2[%c0_0, %c0_1] : memref<128x48xf32, #tpu.memory_space<vmem>>, vector<128x48xf32>
    %c0_2 = arith.constant 0 : index
    %c0_3 = arith.constant 0 : index
    %2 = vector.load %arg3[%c0_2, %c0_3] : memref<48x128xf32, #tpu.memory_space<vmem>>, vector<48x128xf32>
    %cst = arith.constant dense<0.000000e+00> : vector<128x128xf32>
    %3 = tpu.matmul %1, %2, %cst {dimension_numbers = #tpu.dot_dimension_numbers<[1], [0], [0], [1], [0, 0, 1, 1], [], []>} : vector<128x48xf32>, vector<48x128xf32>, vector<128x128xf32> -> vector<128x128xf32>
    %c0_4 = arith.constant 0 : index
    %c0_5 = arith.constant 0 : index
    %4 = vector.load %arg4[%c0_4, %c0_5] : memref<1x128xf32, #tpu.memory_space<vmem>>, vector<1x128xf32>
    %5 = vector.broadcast %4 : vector<1x128xf32> to vector<128x128xf32>
    %6 = arith.addf %3, %5 : vector<128x128xf32>
    %cst_6 = arith.constant 0.000000e+00 : f32
    %7 = vector.broadcast %cst_6 : f32 to vector<128x128xf32>
    %8 = arith.cmpf ogt, %6, %7 : vector<128x128xf32>
    %9 = vector.broadcast %0 : f32 to vector<128x128xf32>
    %10 = arith.mulf %9, %6 : vector<128x128xf32>
    %11 = arith.select %8, %6, %10 : vector<128x128xi1>, vector<128x128xf32>
    %c0_7 = arith.constant 0 : index
    %c0_8 = arith.constant 0 : index
    %12 = vector.load %arg5[%c0_7, %c0_8] : memref<128x128xf32, #tpu.memory_space<vmem>>, vector<128x128xf32>
    %cst_9 = arith.constant dense<0.000000e+00> : vector<128x128xf32>
    %13 = tpu.matmul %11, %12, %cst_9 {dimension_numbers = #tpu.dot_dimension_numbers<[1], [0], [0], [1], [0, 0, 1, 1], [], []>} : vector<128x128xf32>, vector<128x128xf32>, vector<128x128xf32> -> vector<128x128xf32>
    %c0_10 = arith.constant 0 : index
    %c0_11 = arith.constant 0 : index
    %14 = vector.load %arg6[%c0_10, %c0_11] : memref<1x128xf32, #tpu.memory_space<vmem>>, vector<1x128xf32>
    %15 = vector.broadcast %14 : vector<1x128xf32> to vector<128x128xf32>
    %16 = arith.addf %13, %15 : vector<128x128xf32>
    %cst_12 = arith.constant 0.000000e+00 : f32
    %17 = vector.broadcast %cst_12 : f32 to vector<128x128xf32>
    %18 = arith.cmpf ogt, %16, %17 : vector<128x128xf32>
    %19 = vector.broadcast %0 : f32 to vector<128x128xf32>
    %20 = arith.mulf %19, %16 : vector<128x128xf32>
    %21 = arith.select %18, %16, %20 : vector<128x128xi1>, vector<128x128xf32>
    %c0_13 = arith.constant 0 : index
    %c0_14 = arith.constant 0 : index
    %22 = vector.load %arg7[%c0_13, %c0_14] : memref<128x128xf32, #tpu.memory_space<vmem>>, vector<128x128xf32>
    %cst_15 = arith.constant dense<0.000000e+00> : vector<128x128xf32>
    %23 = tpu.matmul %21, %22, %cst_15 {dimension_numbers = #tpu.dot_dimension_numbers<[1], [0], [0], [1], [0, 0, 1, 1], [], []>} : vector<128x128xf32>, vector<128x128xf32>, vector<128x128xf32> -> vector<128x128xf32>
    %c0_16 = arith.constant 0 : index
    %c0_17 = arith.constant 0 : index
    %24 = vector.load %arg8[%c0_16, %c0_17] : memref<1x128xf32, #tpu.memory_space<vmem>>, vector<1x128xf32>
    %25 = vector.broadcast %24 : vector<1x128xf32> to vector<128x128xf32>
    %26 = arith.addf %23, %25 : vector<128x128xf32>
    %c0_18 = arith.constant 0 : index
    %c0_19 = arith.constant 0 : index
    %27 = vector.load %arg9[%c0_18, %c0_19] : memref<128x128xf32, #tpu.memory_space<vmem>>, vector<128x128xf32>
    tpu.vector_store %arg9[%c0_18, %c0_19], %26 {strides = array<i32>} : memref<128x128xf32, #tpu.memory_space<vmem>>, vector<128x128xf32>,
    return
  }
  func.func @transform_0(%arg0: i32) -> i32 {
    %c0_i32 = arith.constant 0 : i32
    %c0_i32_0 = arith.constant 0 : i32
    return %c0_i32 : i32
  }
  func.func @transform_1(%arg0: i32) -> (i32, i32) {
    %c0_i32 = arith.constant 0 : i32
    %c0_i32_0 = arith.constant 0 : i32
    return %arg0, %c0_i32 : i32, i32
  }
  func.func @transform_2(%arg0: i32) -> (i32, i32) {
    %c0_i32 = arith.constant 0 : i32
    %c0_i32_0 = arith.constant 0 : i32
    %c0_i32_1 = arith.constant 0 : i32
    return %c0_i32, %c0_i32_0 : i32, i32
  }
  func.func @transform_3(%arg0: i32) -> (i32, i32) {
    %c0_i32 = arith.constant 0 : i32
    %c0_i32_0 = arith.constant 0 : i32
    %c0_i32_1 = arith.constant 0 : i32
    return %c0_i32, %c0_i32_0 : i32, i32
  }
  func.func @transform_4(%arg0: i32) -> (i32, i32) {
    %c0_i32 = arith.constant 0 : i32
    %c0_i32_0 = arith.constant 0 : i32
    %c0_i32_1 = arith.constant 0 : i32
    return %c0_i32, %c0_i32_0 : i32, i32
  }
  func.func @transform_5(%arg0: i32) -> (i32, i32) {
    %c0_i32 = arith.constant 0 : i32
    %c0_i32_0 = arith.constant 0 : i32
    %c0_i32_1 = arith.constant 0 : i32
    return %c0_i32, %c0_i32_0 : i32, i32
  }
  func.func @transform_6(%arg0: i32) -> (i32, i32) {
    %c0_i32 = arith.constant 0 : i32
    %c0_i32_0 = arith.constant 0 : i32
    %c0_i32_1 = arith.constant 0 : i32
    return %c0_i32, %c0_i32_0 : i32, i32
  }
  func.func @transform_7(%arg0: i32) -> (i32, i32) {
    %c0_i32 = arith.constant 0 : i32
    %c0_i32_0 = arith.constant 0 : i32
    %c0_i32_1 = arith.constant 0 : i32
    return %c0_i32, %c0_i32_0 : i32, i32
  }
  func.func @transform_8(%arg0: i32) -> (i32, i32) {
    %c0_i32 = arith.constant 0 : i32
    %c0_i32_0 = arith.constant 0 : i32
    return %arg0, %c0_i32 : i32, i32
  }
}

</mosaic_0001>

<bundles_post_ra>
// kernel: tpu_custom_call.1
= control target key start
LH: loop header
LB: loop body
LE: loop exit
PB: predicated region body
PF: predicated region fallthrough
CT: control target
= control target key end

     0   :  { %s2049_s0 = inlined_call_operand.<no memory space> [shape: f32[1], index: 0, kind: input, shape index: {}]   ;;  %s2050_s1 = inlined_call_operand.vmem [shape: f32[200,48], index: 1, kind: input, shape index: {}]   ;;  %s2051_s2 = inlined_call_operand.hbm [shape: f32[48,128], index: 2, kind: input, shape index: {}]   ;;  %s2052_s3 = inlined_call_operand.vmem [shape: f32[1,128], index: 3, kind: input, shape index: {}]   ;;  %s2053_s4 = inlined_call_operand.vmem [shape: f32[128,128], index: 4, kind: input, shape index: {}]   ;;  %s2054_s5 = inlined_call_operand.vmem [shape: f32[1,128], index: 5, kind: input, shape index: {}]   ;;  %s2055_s6 = inlined_call_operand.vmem [shape: f32[128,128], index: 6, kind: input, shape index: {}]   ;;  %s2056_s7 = inlined_call_operand.vmem [shape: f32[1,128], index: 7, kind: input, shape index: {}]   ;;  %s2057_s8 = inlined_call_operand.hbm [shape: f32[200,128], index: 8, kind: output, shape index: {}]  }
   0x1   :  { %13 = sst [smem:[#allocation2]] %s2049_s0 }
   0x2   :  { %14 = vsyncpa [#allocation4], 0 }
   0x3   :  { %15 = vsyncpa [#allocation5], 0 }
   0x4   :  { %17 = vsyncpa [#allocation5 + $0x1], 0  ;;  %s1617_s29 = smov 0   ;;  %s1619_s30 = smov 0  }
   0x5   :  { %s1621_s9 = smov 0   ;;  %s1623_s10 = smov 0  }
   0x6 LB: > { %s1638_s0 = sadd.s32 4294967295, %s1561_s10   ;;  %s1114_s11 = sadd.s32 4294967294, %s1561_s10   ;;  %s1561_s10 = sphi %s1623_s10, %s2065_s10   ;;  %s1557_s9 = sphi %s1621_s9, %s2064_s9   ;;  %s1553_s30 = sphi %s1619_s30, %s2063_s30   ;;  %s1549_s29 = sphi %s1617_s29, %s2062_s29  }
   0x7   : > { %s1642_s12 = sadd.s32 1, %s1561_s10   ;;  %s203_s13 = sadd.s32 1, %s1557_s9 }
   0x8   : > { %s200_s14 = ssub.s32 %s1561_s10, %s1642_s12  ;;  %p213_p0 = scmp.ne.s32.totalorder %s1557_s9, %s1553_s30 }
   0x9   : > { %p201_p1 = scmp.eq.s32.totalorder %s200_s14, 0  ;;  %p214_p2 = scmp.eq.s32.totalorder %s1638_s0, 1 }
   0xa   : > { %p219_p3 = scmp.ne.s32.totalorder %s1553_s30, %s1549_s29  ;;  %p220_p4 = scmp.eq.s32.totalorder %s1114_s11, 1 }
   0xb   : > { %s1653_s15 = scalar_select %p201_p1, %s1557_s9, %s203_s13  }
   0xc   : > { %p1655_p5 = por %p214_p2, %p213_p0  ;;  %p1659_p6 = por %p220_p4, %p219_p3 }
   0xd   : > { %p1115_p7 = scmp.ge.s32.totalorder %s1561_s10, 1  ;;  %p227_p8 = scmp.lt.s32.totalorder %s1561_s10, 3 }
   0xe   : > { %s2059_s17 = scalar_select %p1659_p6, 1, 0 }
   0xf   : > { %p1431_p9 = scmp.eq.s32.totalorder %s1638_s0, 0  ;;  %p1666_p10 = pnand %p1115_p7, %p227_p8 }
  0x10   : > { %s1563_s19 = smov [#allocation3]  }
  0x11   : > { %s242_s20 = sshll.u32 %s1563_s19, 4  ;;  %p1423_p11 = pneg %p1666_p10  ;;  %s243_s20 = int_to_ptr.vmem [resolvable:$true] %s242_s20 }
  0x12   : > { %s1482_s21 = scalar_lea.vmem %s243_s20, 768  ;;  %p1490_p3 = scmp.lt.s32.totalorder %s243_s20, %s243_s20 }
  0x13   : > { %p1424_p12 = pnand %p1431_p9, %p1423_p11  ;;  %p1483_p0 = scmp.ne.s32.totalorder %s243_s20, %s1482_s21 }
  0x14   : > { %p1491_p4 = scmp.lt.s32.totalorder %s1482_s21, %s1482_s21 }
  0x15   : > { %p1473_p13 = pneg %p1424_p12 }
  0x16   : > { %p1492_p6 = por %p1491_p4, %p1490_p3 }
  0x17   : > { %p1485_p1 = pnand %p1483_p0, %p1473_p13 }
  0x19   : > { %p1486_p2 = pneg %p1485_p1 }
  0x1b   : > { %p1493_p7 = pnand %p1492_p6, %p1486_p2 }
  0x1d   : > { %1496 = shalt.err (!%p1493_p7)
}
  0x1e   : > { %s1564_s22 = smov 128   ;;  %s1565_s23 = smov 8  }
  0x1f   : > { %1426 = dma.hbm_to_vmem [thread:$0]  (!%p1424_p12), %s2051_s2, 768, %s243_s20, [#allocation4], %s1564_s22, %s1564_s22, %s1565_s23  }
  0x20   : > { %290 = sbr.rel (%p1666_p10) target bundleno = 706 (0x2c2), region = 52 }
  0x25   : > { %1540 = dma.done.wait (%p1431_p9), [#allocation4], 768  }
  0x26   : > { %1542 = vsyncadd (%p1431_p9), [#allocation4], 4294966528  ;;  %s1684_s26 = sshll.u32 %s1638_s0, 4  ;;  %v369_v0 = vld [vmem:[#allocation3 + $0x28] sm:$0xff]  ;;  %v368_v1 = vld [vmem:[#allocation3 + $0x20] sm:$0xff]  ;;  %vm377_vm0 = vcmask 392192  }
  0x27   : > { %p333_p6 = scmp.lt.s32.totalorder %s1684_s26, 24  ;;  %1238 = vmatprep.subr.mxu0 %v369_v0  ;;  %v367_v2 = vld [vmem:[#allocation3 + $0x18] sm:$0xff]  ;;  %v366_v4 = vld [vmem:[#allocation3 + $0x10] sm:$0xff]  ;;  %v365_v5 = vld [vmem:[#allocation3 + $0x8] sm:$0xff]  ;;  %s1029_s13 = ssub.s32 (%p1655_p5), 25, %s1684_s26 }
  0x28   : > { %1239 = vmatpush3.msra.mxu0 %v369_v0  ;;  %v635_v6 = vld [vmem:[%s2053_s4 + $0x78] sm:$0xff]  ;;  %v634_v7 = vld [vmem:[%s2053_s4 + $0x70] sm:$0xff]  ;;  %v364_v8 = vld [vmem:[#allocation3] sm:$0xff]  ;;  %p1030_p8 = scmp.lt.s32.totalorder (%p1655_p5), %s1029_s13, 16 }
  0x29   : > { %s334_s27 = scalar_select %p333_p6, %s1684_s26, 24  ;;  %1240 = vmatprep.subr.mxu0 %v368_v1  ;;  %1274 = vmatprep.subr.mxu1 %v635_v6  ;;  %v633_v9 = vld [vmem:[%s2053_s4 + $0x68] sm:$0xff]  ;;  %v632_v12 = vld [vmem:[%s2053_s4 + $0x60] sm:$0xff]  ;;  %v631_v13 = vld [vmem:[%s2053_s4 + $0x58] sm:$0xff] }
  0x2a   : > { %1241 = vmatpush3.msra.mxu0 %v368_v1  ;;  %1275 = vmatpush3.msra.mxu1 %v635_v6  ;;  %v630_v16 = vld [vmem:[%s2053_s4 + $0x50] sm:$0xff]  ;;  %v629_v17 = vld [vmem:[%s2053_s4 + $0x48] sm:$0xff]  ;;  %v628_v20 = vld [vmem:[%s2053_s4 + $0x40] sm:$0xff] }
  0x2b   : > { %s1122_s28 = sshll.u32 %s334_s27, 3  ;;  %1242 = vmatprep.subr.mxu0 %v367_v2  ;;  %1276 = vmatprep.subr.mxu1 %v634_v7  ;;  %v627_v21 = vld [vmem:[%s2053_s4 + $0x38] sm:$0xff]  ;;  %v626_v24 = vld [vmem:[%s2053_s4 + $0x30] sm:$0xff]  ;;  %v625_v25 = vld [vmem:[%s2053_s4 + $0x28] sm:$0xff] }
  0x2c   : > { %s1691_s14 = scalar_lea.vmem %s2050_s1, %s1122_s28  ;;  %1243 = vmatpush3.msra.mxu0 %v367_v2  ;;  %1277 = vmatpush3.msra.mxu1 %v634_v7  ;;  %v624_v28 = vld [vmem:[%s2053_s4 + $0x20] sm:$0xff]  ;;  %v623_v34 = vld [vmem:[%s2053_s4 + $0x18] sm:$0xff]  ;;  %v622_v35 = vld [vmem:[%s2053_s4 + $0x10] sm:$0xff] }
  0x2d   : > { %v348_v3 = vld [vmem:[%s1691_s14] sm:$0xff]  ;;  %1244 = vmatprep.subr.mxu0 %v366_v4  ;;  %v349_v10 = vld [vmem:[%s1691_s14 + $0x8] sm:$0xff]  ;;  %v350_v11 = vld [vmem:[%s1691_s14 + $0x10] sm:$0xff]  ;;  %1278 = vmatprep.subr.mxu1 %v633_v9 }
  0x2e   : > { %1250 = vmatprep.mubr.msk.f32.mxu0 %vm377_vm0, %v348_v3  ;;  %1245 = vmatpush3.msra.mxu0 %v366_v4  ;;  %v351_v14 = vld [vmem:[%s1691_s14 + $0x18] sm:$0xff]  ;;  %v352_v15 = vld [vmem:[%s1691_s14 + $0x20] sm:$0xff]  ;;  %v353_v18 = vld [vmem:[%s1691_s14 + $0x28] sm:$0xff] }
  0x2f   : > { %1246 = vmatprep.subr.mxu0 %v365_v5  ;;  %1279 = vmatpush3.msra.mxu1 %v633_v9  ;;  %v354_v19 = vld [vmem:[%s1691_s14 + $0x30] sm:$0xff]  ;;  %v355_v22 = vld [vmem:[%s1691_s14 + $0x38] sm:$0xff]  ;;  %v356_v23 = vld [vmem:[%s1691_s14 + $0x40] sm:$0xff] }
  0x30   : > { %1247 = vmatpush3.msra.mxu0 %v365_v5  ;;  %1280 = vmatprep.subr.mxu1 %v632_v12  ;;  %v357_v26 = vld [vmem:[%s1691_s14 + $0x48] sm:$0xff]  ;;  %v358_v27 = vld [vmem:[%s1691_s14 + $0x50] sm:$0xff]  ;;  %v359_v29 = vld [vmem:[%s1691_s14 + $0x58] sm:$0xff] }
  0x31   : > { %1248 = vmatprep.subr.mxu0 %v364_v8  ;;  %1281 = vmatpush3.msra.mxu1 %v632_v12  ;;  %v360_v30 = vld [vmem:[%s1691_s14 + $0x60] sm:$0xff]  ;;  %v361_v31 = vld [vmem:[%s1691_s14 + $0x68] sm:$0xff]  ;;  %v362_v32 = vld [vmem:[%s1691_s14 + $0x70] sm:$0xff] }
  0x32   : > { %1249 = vmatpush3.msra.mxu0 %v364_v8  ;;  %1282 = vmatprep.subr.mxu1 %v631_v13  ;;  %v363_v33 = vld [vmem:[%s1691_s14 + $0x78] sm:$0xff]  ;;  %v621_v36 = vld [vmem:[%s2053_s4 + $0x8] sm:$0xff]  ;;  %v620_v37 = vld [vmem:[%s2053_s4] sm:$0xff]  ;;  %s347_s14 = sld [smem:[#allocation2]] }
  0x33   : > { %1251 = vmatmul.mubr.msk.f32.vlgmr.msra.gmra.mxu0 %vm377_vm0, %v349_v10  ;;  %1283 = vmatpush3.msra.mxu1 %v631_v13  ;;  %v851_v38 = vld [vmem:[%s2055_s6 + $0x78] sm:$0xff]  ;;  %v1779_v39 = vld [vmem:[%s2055_s6 + $0x70] sm:$0xff]  ;;  %v1784_v40 = vld [vmem:[%s2055_s6 + $0x68] sm:$0xff] }
  0x34   : > { %1253 = vmatprep.mubr.msk.f32.mxu0 %vm377_vm0, %v350_v11  ;;  %1284 = vmatprep.subr.mxu1 %v630_v16  ;;  %v1791_v41 = vld [vmem:[%s2055_s6 + $0x60] sm:$0xff]  ;;  %v1798_v42 = vld [vmem:[%s2055_s6 + $0x58] sm:$0xff]  ;;  %v1805_v43 = vld [vmem:[%s2055_s6 + $0x50] sm:$0xff] }
  0x35   : > { %1285 = vmatpush3.msra.mxu1 %v630_v16  ;;  %1330 = vmatprep.subr.mxu0 %v851_v38  ;;  %v1812_v44 = vld [vmem:[%s2055_s6 + $0x48] sm:$0xff]  ;;  %v1819_v45 = vld [vmem:[%s2055_s6 + $0x40] sm:$0xff]  ;;  %v1826_v46 = vld [vmem:[%s2055_s6 + $0x38] sm:$0xff] }
  0x36   : > { %1286 = vmatprep.subr.mxu1 %v629_v17  ;;  %1331 = vmatpush3.msra.mxu0 %v851_v38  ;;  %v1833_v47 = vld [vmem:[%s2055_s6 + $0x30] sm:$0xff]  ;;  %v1840_v48 = vld [vmem:[%s2055_s6 + $0x28] sm:$0xff]  ;;  %v1847_v49 = vld [vmem:[%s2055_s6 + $0x20] sm:$0xff] }
  0x37   : > { %1254 = vmatmul.mubr.msk.f32.gmra.mxu0 %vm377_vm0, %v351_v14  ;;  %1287 = vmatpush3.msra.mxu1 %v629_v17  ;;  %v1856_v50 = vld [vmem:[%s2052_s3] ss:$0 sm:$0xff] }
  0x38   : > { %1256 = vmatprep.mubr.msk.f32.mxu0 %vm377_vm0, %v352_v15  ;;  %1288 = vmatprep.subr.mxu1 %v628_v20  ;;  %v1859_v53 = vstv %s347_s14  ;;  %s325_s14 = sand.u32 1, %s1553_s30  }
  0x39   : > { %1289 = vmatpush3.msra.mxu1 %v628_v20  ;;  %1332 = vmatprep.subr.mxu0 %v1779_v39  ;;  %s1120_s24 = sshll.u32 %s325_s14, 7  ;;  %s1989_s11 = scalar_lea.sflag [#allocation5], %s325_s14 }
  0x3a   : > { %1290 = vmatprep.subr.mxu1 %v627_v21  ;;  %1333 = vmatpush3.msra.mxu0 %v1779_v39  ;;  %s1969_s28 = scalar_lea.vmem [#allocation6], %s1120_s24 }
  0x3b   : > { %1257 = vmatmul.mubr.msk.f32.gmra.mxu0 %vm377_vm0, %v353_v18  ;;  %1291 = vmatpush3.msra.mxu1 %v627_v21 }
  0x3c   : > { %1259 = vmatprep.mubr.msk.f32.mxu0 %vm377_vm0, %v354_v19  ;;  %1292 = vmatprep.subr.mxu1 %v626_v24 }
  0x3d   : > { %1293 = vmatpush3.msra.mxu1 %v626_v24  ;;  %1334 = vmatprep.subr.mxu0 %v1784_v40 }
  0x3e   : > { %1294 = vmatprep.subr.mxu1 %v625_v25  ;;  %1335 = vmatpush3.msra.mxu0 %v1784_v40 }
  0x3f   : > { %1260 = vmatmul.mubr.msk.f32.gmra.mxu0 %vm377_vm0, %v355_v22  ;;  %1295 = vmatpush3.msra.mxu1 %v625_v25 }
  0x40   : > { %1262 = vmatprep.mubr.msk.f32.mxu0 %vm377_vm0, %v356_v23  ;;  %1296 = vmatprep.subr.mxu1 %v624_v28 }
  0x41   : > { %1297 = vmatpush3.msra.mxu1 %v624_v28  ;;  %1336 = vmatprep.subr.mxu0 %v1791_v41 }
  0x42   : > { %1298 = vmatprep.subr.mxu1 %v623_v34  ;;  %1337 = vmatpush3.msra.mxu0 %v1791_v41 }
  0x43   : > { %1263 = vmatmul.mubr.msk.f32.gmra.mxu0 %vm377_vm0, %v357_v26  ;;  %1299 = vmatpush3.msra.mxu1 %v623_v34 }
  0x44   : > { %1265 = vmatprep.mubr.msk.f32.mxu0 %vm377_vm0, %v358_v27  ;;  %1300 = vmatprep.subr.mxu1 %v622_v35 }
  0x45   : > { %1301 = vmatpush3.msra.mxu1 %v622_v35  ;;  %1338 = vmatprep.subr.mxu0 %v1798_v42 }
  0x46   : > { %1302 = vmatprep.subr.mxu1 %v621_v36  ;;  %1339 = vmatpush3.msra.mxu0 %v1798_v42 }
  0x47   : > { %1266 = vmatmul.mubr.msk.f32.gmra.mxu0 %vm377_vm0, %v359_v29  ;;  %1303 = vmatpush3.msra.mxu1 %v621_v36 }
  0x48   : > { %1268 = vmatprep.mubr.msk.f32.mxu0 %vm377_vm0, %v360_v30  ;;  %1304 = vmatprep.subr.mxu1 %v620_v37 }
  0x49   : > { %1305 = vmatpush3.msra.mxu1 %v620_v37  ;;  %1340 = vmatprep.subr.mxu0 %v1805_v43 }
  0x4a   : > { %1386 = vmatprep.subr.mxu1 %v851_v38  ;;  %1341 = vmatpush3.msra.mxu0 %v1805_v43 }
  0x4b   : > { %1269 = vmatmul.mubr.msk.f32.gmra.mxu0 %vm377_vm0, %v361_v31  ;;  %1342 = vmatprep.subr.mxu0 %v1812_v44 }
  0x4c   : > { %1271 = vmatprep.mubr.msk.f32.mxu0 %vm377_vm0, %v362_v32  ;;  %1343 = vmatpush3.msra.mxu0 %v1812_v44 }
  0x4d   : > { %1344 = vmatprep.subr.mxu0 %v1819_v45 }
  0x4e   : > { %1345 = vmatpush3.msra.mxu0 %v1819_v45 }
  0x4f   : > { %1272 = vmatmul.mubr.msk.f32.gmra.mxu0 %vm377_vm0, %v363_v33  ;;  %1346 = vmatprep.subr.mxu0 %v1826_v46 }
  0x50   : > { %1347 = vmatpush3.msra.mxu0 %v1826_v46 }
  0x51   : > { %1348 = vmatprep.subr.mxu0 %v1833_v47 }
  0x52   : > { %1349 = vmatpush3.msra.mxu0 %v1833_v47 }
  0x53   : > { %1350 = vmatprep.subr.mxu0 %v1840_v48 }
  0x54   : > { %1351 = vmatpush3.msra.mxu0 %v1840_v48 }
  0x55   : > { %1352 = vmatprep.subr.mxu0 %v1847_v49 }
  0x56   : > { %1353 = vmatpush3.msra.mxu0 %v1847_v49 }
  0xf3   : > { %v1252_v51 = vpop.f32.mrf.mxu0 }
  0xf4   : > { %v498_v52 = vadd.f32 %v1252_v51, %v1856_v50 }
  0xf5   : > { %v492_v54 = vpop.f32.mrf.mxu0 }
  0xf6   : > { %v493_v55 = vadd.f32 %v1856_v50, %v492_v54  ;;  %v589_v56 = vmul.f32 %v1859_v53, %v498_v52  ;;  %vm572_vm2 = vcmp.gt.f32.partialorder %v498_v52, 0.0 }
  0xf7   : > { %v1255_v57 = vpop.f32.mrf.mxu0 }
  0xf8   : > { %v508_v58 = vadd.f32 %v1255_v57, %v1856_v50  ;;  %vm571_vm1 = vcmp.gt.f32.partialorder %v493_v55, 0.0  ;;  %v588_v59 = vmul.f32 %v1859_v53, %v493_v55  ;;  %v605_v1 = vsel %vm572_vm2, %v498_v52, %v589_v56  ;;  %v836_v56 = vld [vmem:[%s2055_s6] sm:$0xff] }
  0xf9   : > { %v502_v60 = vpop.f32.mrf.mxu0  ;;  %v1929_v57 = vld [vmem:[%s2054_s5] ss:$0 sm:$0xff] }
  0xfa   : > { %v503_v61 = vadd.f32 %v1856_v50, %v502_v60  ;;  %v604_v62 = vsel %vm571_vm1, %v493_v55, %v588_v59  ;;  %v591_v63 = vmul.f32 %v1859_v53, %v508_v58  ;;  %vm574_vm4 = vcmp.gt.f32.partialorder %v508_v58, 0.0 }
  0xfb   : > { %v1258_v0 = vpop.f32.mrf.mxu0  ;;  %1306 = vmatprep.mubr.f32.mxu1 %v604_v62 }
  0xfc   : > { %v590_v2 = vmul.f32 %v1859_v53, %v503_v61  ;;  %v518_v3 = vadd.f32 %v1258_v0, %v1856_v50  ;;  %1307 = vmatmul.mubr.f32.vlgmr.msra.gmra.mxu1 %v605_v1  ;;  %vm573_vm3 = vcmp.gt.f32.partialorder %v503_v61, 0.0  ;;  %v607_v9 = vsel %vm574_vm4, %v508_v58, %v591_v63 }
  0xfd   : > { %v512_v4 = vpop.f32.mrf.mxu0  ;;  %1402 = vmatpush3.msra.mxu1 %v851_v38 }
  0xfe   : > { %v513_v5 = vadd.f32 %v1856_v50, %v512_v4  ;;  %v606_v6 = vsel %vm573_vm3, %v503_v61, %v590_v2  ;;  %1387 = vmatprep.subr.mxu1 %v1779_v39  ;;  %v593_v7 = vmul.f32 %v1859_v53, %v518_v3  ;;  %vm576_vm6 = vcmp.gt.f32.partialorder %v518_v3, 0.0 }
  0xff   : > { %v1261_v8 = vpop.f32.mrf.mxu0  ;;  %1309 = vmatprep.mubr.f32.mxu1 %v606_v6  ;;  %1403 = vmatpush3.msra.mxu1 %v1779_v39 }
 0x100   : > { %v592_v10 = vmul.f32 %v1859_v53, %v513_v5  ;;  %v528_v11 = vadd.f32 %v1261_v8, %v1856_v50  ;;  %1310 = vmatmul.mubr.f32.gmra.mxu1 %v607_v9  ;;  %vm575_vm5 = vcmp.gt.f32.partialorder %v513_v5, 0.0  ;;  %1388 = vmatprep.subr.mxu1 %v1784_v40  ;;  %v609_v17 = vsel %vm576_vm6, %v518_v3, %v593_v7 }
 0x101   : > { %v522_v12 = vpop.f32.mrf.mxu0  ;;  %1404 = vmatpush3.msra.mxu1 %v1784_v40 }
 0x102   : > { %v523_v13 = vadd.f32 %v1856_v50, %v522_v12  ;;  %v608_v14 = vsel %vm575_vm5, %v513_v5, %v592_v10  ;;  %1389 = vmatprep.subr.mxu1 %v1791_v41  ;;  %v595_v15 = vmul.f32 %v1859_v53, %v528_v11  ;;  %vm578_vm8 = vcmp.gt.f32.partialorder %v528_v11, 0.0 }
 0x103   : > { %v1264_v16 = vpop.f32.mrf.mxu0  ;;  %1312 = vmatprep.mubr.f32.mxu1 %v608_v14  ;;  %1405 = vmatpush3.msra.mxu1 %v1791_v41 }
 0x104   : > { %v594_v18 = vmul.f32 %v1859_v53, %v523_v13  ;;  %v538_v19 = vadd.f32 %v1264_v16, %v1856_v50  ;;  %1313 = vmatmul.mubr.f32.gmra.mxu1 %v609_v17  ;;  %vm577_vm7 = vcmp.gt.f32.partialorder %v523_v13, 0.0  ;;  %1390 = vmatprep.subr.mxu1 %v1798_v42  ;;  %v611_v25 = vsel %vm578_vm8, %v528_v11, %v595_v15 }
 0x105   : > { %v532_v20 = vpop.f32.mrf.mxu0  ;;  %1406 = vmatpush3.msra.mxu1 %v1798_v42 }
 0x106   : > { %v533_v21 = vadd.f32 %v1856_v50, %v532_v20  ;;  %v610_v22 = vsel %vm577_vm7, %v523_v13, %v594_v18  ;;  %1391 = vmatprep.subr.mxu1 %v1805_v43  ;;  %v597_v23 = vmul.f32 %v1859_v53, %v538_v19  ;;  %vm580_vm10 = vcmp.gt.f32.partialorder %v538_v19, 0.0 }
 0x107   : > { %v1267_v24 = vpop.f32.mrf.mxu0  ;;  %1315 = vmatprep.mubr.f32.mxu1 %v610_v22  ;;  %1407 = vmatpush3.msra.mxu1 %v1805_v43 }
 0x108   : > { %v596_v26 = vmul.f32 %v1859_v53, %v533_v21  ;;  %v548_v27 = vadd.f32 %v1267_v24, %v1856_v50  ;;  %1316 = vmatmul.mubr.f32.gmra.mxu1 %v611_v25  ;;  %vm579_vm9 = vcmp.gt.f32.partialorder %v533_v21, 0.0  ;;  %1392 = vmatprep.subr.mxu1 %v1812_v44  ;;  %v613_v33 = vsel %vm580_vm10, %v538_v19, %v597_v23 }
 0x109   : > { %v542_v28 = vpop.f32.mrf.mxu0  ;;  %1408 = vmatpush3.msra.mxu1 %v1812_v44 }
 0x10a   : > { %v543_v29 = vadd.f32 %v1856_v50, %v542_v28  ;;  %v612_v30 = vsel %vm579_vm9, %v533_v21, %v596_v26  ;;  %1393 = vmatprep.subr.mxu1 %v1819_v45  ;;  %v599_v31 = vmul.f32 %v1859_v53, %v548_v27  ;;  %vm582_vm12 = vcmp.gt.f32.partialorder %v548_v27, 0.0 }
 0x10b   : > { %v1270_v32 = vpop.f32.mrf.mxu0  ;;  %1318 = vmatprep.mubr.f32.mxu1 %v612_v30  ;;  %1409 = vmatpush3.msra.mxu1 %v1819_v45 }
 0x10c   : > { %v598_v34 = vmul.f32 %v1859_v53, %v543_v29  ;;  %v558_v35 = vadd.f32 %v1270_v32, %v1856_v50  ;;  %1319 = vmatmul.mubr.f32.gmra.mxu1 %v613_v33  ;;  %vm581_vm11 = vcmp.gt.f32.partialorder %v543_v29, 0.0  ;;  %1394 = vmatprep.subr.mxu1 %v1826_v46  ;;  %v615_v41 = vsel %vm582_vm12, %v548_v27, %v599_v31 }
 0x10d   : > { %v552_v36 = vpop.f32.mrf.mxu0  ;;  %1410 = vmatpush3.msra.mxu1 %v1826_v46 }
 0x10e   : > { %v553_v37 = vadd.f32 %v1856_v50, %v552_v36  ;;  %v614_v38 = vsel %vm581_vm11, %v543_v29, %v598_v34  ;;  %1395 = vmatprep.subr.mxu1 %v1833_v47  ;;  %v601_v39 = vmul.f32 %v1859_v53, %v558_v35  ;;  %vm584_vm14 = vcmp.gt.f32.partialorder %v558_v35, 0.0 }
 0x10f   : > { %v1273_v40 = vpop.f32.mrf.mxu0  ;;  %1321 = vmatprep.mubr.f32.mxu1 %v614_v38  ;;  %1411 = vmatpush3.msra.mxu1 %v1833_v47 }
 0x110   : > { %v600_v42 = vmul.f32 %v1859_v53, %v553_v37  ;;  %v568_v43 = vadd.f32 %v1273_v40, %v1856_v50  ;;  %1322 = vmatmul.mubr.f32.gmra.mxu1 %v615_v41  ;;  %vm583_vm13 = vcmp.gt.f32.partialorder %v553_v37, 0.0  ;;  %1396 = vmatprep.subr.mxu1 %v1840_v48  ;;  %v617_v47 = vsel %vm584_vm14, %v558_v35, %v601_v39 }
 0x111   : > { %v562_v44 = vpop.f32.mrf.mxu0  ;;  %1412 = vmatpush3.msra.mxu1 %v1840_v48  ;;  %v839_v48 = vld [vmem:[%s2055_s6 + $0x18] sm:$0xff] }
 0x112   : > { %v563_v45 = vadd.f32 %v1856_v50, %v562_v44  ;;  %v616_v46 = vsel %vm583_vm13, %v553_v37, %v600_v42  ;;  %1397 = vmatprep.subr.mxu1 %v1847_v49  ;;  %v603_v51 = vmul.f32 %v1859_v53, %v568_v43  ;;  %vm586_vm0 = vcmp.gt.f32.partialorder %v568_v43, 0.0  ;;  %1354 = vmatprep.subr.mxu0 %v839_v48  ;;  %v837_v50 = vld [vmem:[%s2055_s6 + $0x8] sm:$0xff] }
 0x113   : > { %1324 = vmatprep.mubr.f32.mxu1 %v616_v46  ;;  %1413 = vmatpush3.msra.mxu1 %v1847_v49  ;;  %v838_v49 = vld [vmem:[%s2055_s6 + $0x10] sm:$0xff] }
 0x114   : > { %v602_v52 = vmul.f32 %v1859_v53, %v563_v45  ;;  %1325 = vmatmul.mubr.f32.gmra.mxu1 %v617_v47  ;;  %vm585_vm15 = vcmp.gt.f32.partialorder %v563_v45, 0.0  ;;  %v619_v55 = vsel %vm586_vm0, %v568_v43, %v603_v51  ;;  %1398 = vmatprep.subr.mxu1 %v839_v48 }
 0x115   : > { %1355 = vmatpush3.msra.mxu0 %v839_v48  ;;  %1414 = vmatpush3.msra.mxu1 %v839_v48 }
 0x116   : > { %v618_v54 = vsel %vm585_vm15, %v563_v45, %v602_v52  ;;  %1356 = vmatprep.subr.mxu0 %v838_v49  ;;  %1399 = vmatprep.subr.mxu1 %v838_v49 }
 0x117   : > { %1327 = vmatprep.mubr.f32.mxu1 %v618_v54  ;;  %1357 = vmatpush3.msra.mxu0 %v838_v49 }
 0x118   : > { %1328 = vmatmul.mubr.f32.gmra.mxu1 %v619_v55  ;;  %1358 = vmatprep.subr.mxu0 %v837_v50 }
 0x119   : > { %1415 = vmatpush3.msra.mxu1 %v838_v49  ;;  %1359 = vmatpush3.msra.mxu0 %v837_v50 }
 0x11a   : > { %1400 = vmatprep.subr.mxu1 %v837_v50  ;;  %1360 = vmatprep.subr.mxu0 %v836_v56 }
 0x11b   : > { %1416 = vmatpush3.msra.mxu1 %v837_v50  ;;  %1361 = vmatpush3.msra.mxu0 %v836_v56 }
 0x11c   : > { %1401 = vmatprep.subr.mxu1 %v836_v56 }
 0x11d   : > { %1417 = vmatpush3.msra.mxu1 %v836_v56 }
 0x1bc   : > { %v1308_v58 = vpop.f32.mrf.mxu1 }
 0x1bd   : > { %v715_v59 = vadd.f32 %v1308_v58, %v1929_v57 }
 0x1be   : > { %v709_v60 = vpop.f32.mrf.mxu1 }
 0x1bf   : > { %v710_v61 = vadd.f32 %v1929_v57, %v709_v60  ;;  %v805_v62 = vmul.f32 %v715_v59, %v1859_v53  ;;  %vm789_vm1 = vcmp.gt.f32.partialorder %v715_v59, 0.0 }
 0x1c0   : > { %v1311_v63 = vpop.f32.mrf.mxu1 }
 0x1c1   : > { %v804_v0 = vmul.f32 %v710_v61, %v1859_v53  ;;  %v725_v1 = vadd.f32 %v1311_v63, %v1929_v57  ;;  %vm788_vm2 = vcmp.gt.f32.partialorder %v710_v61, 0.0  ;;  %v821_v5 = vsel %vm789_vm1, %v715_v59, %v805_v62 }
 0x1c2   : > { %v719_v2 = vpop.f32.mrf.mxu1 }
 0x1c3   : > { %v720_v3 = vadd.f32 %v1929_v57, %v719_v2  ;;  %v820_v4 = vsel %vm788_vm2, %v710_v61, %v804_v0  ;;  %v807_v6 = vmul.f32 %v725_v1, %v1859_v53  ;;  %vm791_vm4 = vcmp.gt.f32.partialorder %v725_v1, 0.0 }
 0x1c4   : > { %v1314_v7 = vpop.f32.mrf.mxu1  ;;  %1362 = vmatprep.mubr.f32.mxu0 %v820_v4 }
 0x1c5   : > { %v806_v8 = vmul.f32 %v720_v3, %v1859_v53  ;;  %v735_v9 = vadd.f32 %v1314_v7, %v1929_v57  ;;  %1363 = vmatmul.mubr.f32.vlgmr.msra.gmra.mxu0 %v821_v5  ;;  %vm790_vm3 = vcmp.gt.f32.partialorder %v720_v3, 0.0  ;;  %v823_v15 = vsel %vm791_vm4, %v725_v1, %v807_v6 }
 0x1c6   : > { %v729_v10 = vpop.f32.mrf.mxu1 }
 0x1c7   : > { %v730_v11 = vadd.f32 %v1929_v57, %v729_v10  ;;  %v822_v12 = vsel %vm790_vm3, %v720_v3, %v806_v8  ;;  %v809_v13 = vmul.f32 %v735_v9, %v1859_v53  ;;  %vm793_vm6 = vcmp.gt.f32.partialorder %v735_v9, 0.0 }
 0x1c8   : > { %v1317_v14 = vpop.f32.mrf.mxu1  ;;  %1365 = vmatprep.mubr.f32.mxu0 %v822_v12 }
 0x1c9   : > { %v808_v16 = vmul.f32 %v730_v11, %v1859_v53  ;;  %v745_v17 = vadd.f32 %v1317_v14, %v1929_v57  ;;  %1366 = vmatmul.mubr.f32.gmra.mxu0 %v823_v15  ;;  %vm792_vm5 = vcmp.gt.f32.partialorder %v730_v11, 0.0  ;;  %v825_v23 = vsel %vm793_vm6, %v735_v9, %v809_v13 }
 0x1ca   : > { %v739_v18 = vpop.f32.mrf.mxu1 }
 0x1cb   : > { %v740_v19 = vadd.f32 %v1929_v57, %v739_v18  ;;  %v824_v20 = vsel %vm792_vm5, %v730_v11, %v808_v16  ;;  %v811_v21 = vmul.f32 %v745_v17, %v1859_v53  ;;  %vm795_vm8 = vcmp.gt.f32.partialorder %v745_v17, 0.0 }
 0x1cc   : > { %v1320_v22 = vpop.f32.mrf.mxu1  ;;  %1368 = vmatprep.mubr.f32.mxu0 %v824_v20 }
 0x1cd   : > { %v810_v24 = vmul.f32 %v740_v19, %v1859_v53  ;;  %v755_v25 = vadd.f32 %v1320_v22, %v1929_v57  ;;  %1369 = vmatmul.mubr.f32.gmra.mxu0 %v825_v23  ;;  %vm794_vm7 = vcmp.gt.f32.partialorder %v740_v19, 0.0  ;;  %v827_v31 = vsel %vm795_vm8, %v745_v17, %v811_v21 }
 0x1ce   : > { %v749_v26 = vpop.f32.mrf.mxu1 }
 0x1cf   : > { %v750_v27 = vadd.f32 %v1929_v57, %v749_v26  ;;  %v826_v28 = vsel %vm794_vm7, %v740_v19, %v810_v24  ;;  %v813_v29 = vmul.f32 %v755_v25, %v1859_v53  ;;  %vm797_vm10 = vcmp.gt.f32.partialorder %v755_v25, 0.0 }
 0x1d0   : > { %v1323_v30 = vpop.f32.mrf.mxu1  ;;  %1371 = vmatprep.mubr.f32.mxu0 %v826_v28 }
 0x1d1   : > { %v812_v32 = vmul.f32 %v750_v27, %v1859_v53  ;;  %v765_v33 = vadd.f32 %v1323_v30, %v1929_v57  ;;  %1372 = vmatmul.mubr.f32.gmra.mxu0 %v827_v31  ;;  %vm796_vm9 = vcmp.gt.f32.partialorder %v750_v27, 0.0  ;;  %v829_v39 = vsel %vm797_vm10, %v755_v25, %v813_v29 }
 0x1d2   : > { %v759_v34 = vpop.f32.mrf.mxu1 }
 0x1d3   : > { %v760_v35 = vadd.f32 %v1929_v57, %v759_v34  ;;  %v828_v36 = vsel %vm796_vm9, %v750_v27, %v812_v32  ;;  %v815_v37 = vmul.f32 %v765_v33, %v1859_v53  ;;  %vm799_vm12 = vcmp.gt.f32.partialorder %v765_v33, 0.0 }
 0x1d4   : > { %v1326_v38 = vpop.f32.mrf.mxu1  ;;  %1374 = vmatprep.mubr.f32.mxu0 %v828_v36 }
 0x1d5   : > { %v814_v40 = vmul.f32 %v760_v35, %v1859_v53  ;;  %v775_v41 = vadd.f32 %v1326_v38, %v1929_v57  ;;  %1375 = vmatmul.mubr.f32.gmra.mxu0 %v829_v39  ;;  %vm798_vm11 = vcmp.gt.f32.partialorder %v760_v35, 0.0  ;;  %v831_v51 = vsel %vm799_vm12, %v765_v33, %v815_v37 }
 0x1d6   : > { %v769_v42 = vpop.f32.mrf.mxu1 }
 0x1d7   : > { %v770_v43 = vadd.f32 %v1929_v57, %v769_v42  ;;  %v830_v44 = vsel %vm798_vm11, %v760_v35, %v814_v40  ;;  %v817_v45 = vmul.f32 %v775_v41, %v1859_v53  ;;  %vm801_vm14 = vcmp.gt.f32.partialorder %v775_v41, 0.0 }
 0x1d8   : > { %v1329_v46 = vpop.f32.mrf.mxu1  ;;  %1377 = vmatprep.mubr.f32.mxu0 %v830_v44 }
 0x1d9   : > { %v816_v47 = vmul.f32 %v770_v43, %v1859_v53  ;;  %v785_v52 = vadd.f32 %v1329_v46, %v1929_v57  ;;  %1378 = vmatmul.mubr.f32.gmra.mxu0 %v831_v51  ;;  %vm800_vm13 = vcmp.gt.f32.partialorder %v770_v43, 0.0  ;;  %v833_v50 = vsel %vm801_vm14, %v775_v41, %v817_v45 }
 0x1da   : > { %v779_v54 = vpop.f32.mrf.mxu1 }
 0x1db   : > { %v780_v55 = vadd.f32 %v1929_v57, %v779_v54  ;;  %v832_v48 = vsel %vm800_vm13, %v770_v43, %v816_v47  ;;  %v819_v49 = vmul.f32 %v785_v52, %v1859_v53  ;;  %vm803_vm15 = vcmp.gt.f32.partialorder %v785_v52, 0.0  ;;  %v1141_v57 = vld [vmem:[%s2056_s7] ss:$0 sm:$0xff] }
 0x1dc   : > { %1380 = vmatprep.mubr.f32.mxu0 %v832_v48 }
 0x1dd   : > { %v818_v56 = vmul.f32 %v780_v55, %v1859_v53  ;;  %1381 = vmatmul.mubr.f32.gmra.mxu0 %v833_v50  ;;  %vm802_vm0 = vcmp.gt.f32.partialorder %v780_v55, 0.0  ;;  %v835_v59 = vsel %vm803_vm15, %v785_v52, %v819_v49 }
 0x1df   : > { %v834_v58 = vsel %vm802_vm0, %v780_v55, %v818_v56 }
 0x1e0   : > { %1383 = vmatprep.mubr.f32.mxu1 %v834_v58 }
 0x1e1   : > { %1384 = vmatmul.mubr.f32.vlgmr.msra.gmra.mxu1 %v835_v59 }
 0x285   : > { %v1364_v60 = vpop.f32.mrf.mxu0 }
 0x286   : > { %v931_v61 = vadd.f32 %v1364_v60, %v1141_v57 }
 0x287   : > { %v925_v62 = vpop.f32.mrf.mxu0 }
 0x288   : > { %1005 = vst [vmem:[%s1969_s28 + $0x8] sm:$0xff] %v931_v61  ;;  %v926_v53 = vadd.f32 %v1141_v57, %v925_v62 }
 0x289   : > { %v1367_v63 = vpop.f32.mrf.mxu0 }
 0x28a   : > { %1004 = vst [vmem:[%s1969_s28] sm:$0xff] %v926_v53  ;;  %v941_v0 = vadd.f32 %v1367_v63, %v1141_v57 }
 0x28b   : > { %v935_v1 = vpop.f32.mrf.mxu0 }
 0x28c   : > { %1007 = vst [vmem:[%s1969_s28 + $0x18] sm:$0xff] %v941_v0  ;;  %v936_v2 = vadd.f32 %v1141_v57, %v935_v1 }
 0x28d   : > { %v1370_v3 = vpop.f32.mrf.mxu0 }
 0x28e   : > { %1006 = vst [vmem:[%s1969_s28 + $0x10] sm:$0xff] %v936_v2  ;;  %v951_v4 = vadd.f32 %v1370_v3, %v1141_v57 }
 0x28f   : > { %v945_v5 = vpop.f32.mrf.mxu0 }
 0x290   : > { %1009 = vst [vmem:[%s1969_s28 + $0x28] sm:$0xff] %v951_v4  ;;  %v946_v6 = vadd.f32 %v1141_v57, %v945_v5 }
 0x291   : > { %v1373_v7 = vpop.f32.mrf.mxu0 }
 0x292   : > { %1008 = vst [vmem:[%s1969_s28 + $0x20] sm:$0xff] %v946_v6  ;;  %v961_v8 = vadd.f32 %v1373_v7, %v1141_v57 }
 0x293   : > { %v955_v9 = vpop.f32.mrf.mxu0 }
 0x294   : > { %1011 = vst [vmem:[%s1969_s28 + $0x38] sm:$0xff] %v961_v8  ;;  %v956_v10 = vadd.f32 %v1141_v57, %v955_v9 }
 0x295   : > { %v1376_v11 = vpop.f32.mrf.mxu0 }
 0x296   : > { %1010 = vst [vmem:[%s1969_s28 + $0x30] sm:$0xff] %v956_v10  ;;  %v971_v12 = vadd.f32 %v1376_v11, %v1141_v57 }
 0x297   : > { %v965_v13 = vpop.f32.mrf.mxu0 }
 0x298   : > { %1013 = vst [vmem:[%s1969_s28 + $0x48] sm:$0xff] %v971_v12  ;;  %v966_v14 = vadd.f32 %v1141_v57, %v965_v13 }
 0x299   : > { %v1379_v15 = vpop.f32.mrf.mxu0 }
 0x29a   : > { %1012 = vst [vmem:[%s1969_s28 + $0x40] sm:$0xff] %v966_v14  ;;  %v981_v16 = vadd.f32 %v1379_v15, %v1141_v57 }
 0x29b   : > { %v975_v17 = vpop.f32.mrf.mxu0 }
 0x29c   : > { %1015 = vst [vmem:[%s1969_s28 + $0x58] sm:$0xff] %v981_v16  ;;  %v976_v18 = vadd.f32 %v1141_v57, %v975_v17 }
 0x29d   : > { %v1382_v19 = vpop.f32.mrf.mxu0 }
 0x29e   : > { %1014 = vst [vmem:[%s1969_s28 + $0x50] sm:$0xff] %v976_v18  ;;  %v991_v20 = vadd.f32 %v1382_v19, %v1141_v57 }
 0x29f   : > { %v985_v21 = vpop.f32.mrf.mxu0 }
 0x2a0   : > { %1017 = vst [vmem:[%s1969_s28 + $0x68] sm:$0xff] %v991_v20  ;;  %v986_v22 = vadd.f32 %v1141_v57, %v985_v21 }
 0x2a1   : > { %v1385_v23 = vpop.f32.mrf.mxu1 }
 0x2a2   : > { %1016 = vst [vmem:[%s1969_s28 + $0x60] sm:$0xff] %v986_v22  ;;  %v1001_v24 = vadd.f32 %v1385_v23, %v1141_v57  ;;  %1027 = sbr.rel (!%p1655_p5) target bundleno = 706 (0x2c2), region = 60 }
 0x2a3   : > { %v995_v25 = vpop.f32.mrf.mxu1 }
 0x2a4   : > { %1019 = vst [vmem:[%s1969_s28 + $0x78] sm:$0xff] %v1001_v24  ;;  %v996_v26 = vadd.f32 %v1141_v57, %v995_v25 }
 0x2a6   : > { %1018 = vst [vmem:[%s1969_s28 + $0x70] sm:$0xff] %v996_v26 }
 0x2a7   : > { %s2067_s13 = smov (!%p1030_p8, %s1029_s13), 16 }
 0x2a8   : > { %s1994_s18 = sshll.u32 %s2067_s13, 7 }
 0x2a9   : > { %s1034_s19 = ssub.s32 2048, %s1994_s18 }
 0x2aa   : > { %1035 = vsyncadd %s1989_s11, %s1034_s19  ;;  %p1145_p9 = scmp.ne.s32.totalorder %s1994_s18, 0  ;;  %s1151_s20 = sshll.u32 %s1638_s0, 11 }
 0x2ab   : > { %s2003_s22 = scalar_lea.hbm %s2057_s8, %s1151_s20  ;;  %s1040_s26 = sshll.u32 %s1969_s28, 4  ;;  %s2006_s26 = int_to_ptr.vmem [resolvable:$true] %s1040_s26 }
 0x2ac   : > { %s1497_s23 = scalar_lea.vmem %s2006_s26, %s1994_s18  ;;  %s1566_s14 = smov [#allocation6]  }
 0x2ad   : > { %p1498_p5 = scmp.ne.s32.totalorder %s2006_s26, %s1497_s23  ;;  %s1501_s24 = sshll.u32 %s1566_s14, 4  ;;  %s1502_s24 = int_to_ptr.vmem [resolvable:$false] %s1501_s24 }
 0x2ae   : > { %s1503_s0 = scalar_lea.vmem %s1502_s24, 4096  ;;  %p1504_p12 = scmp.lt.s32.totalorder %s2006_s26, %s1502_s24 }
 0x2af   : > { %p1499_p10 = pnand %p1498_p5, %p1145_p9  ;;  %p1505_p13 = scmp.lt.s32.totalorder %s1503_s0, %s1497_s23 }
 0x2b1   : > { %p1500_p11 = pneg %p1499_p10  ;;  %p1506_p0 = por %p1505_p13, %p1504_p12 }
 0x2b3   : > { %p1507_p1 = pnand %p1506_p0, %p1500_p11 }
 0x2b5   : > { %1510 = shalt.err (!%p1507_p1)
}
 0x2b6   : > { %s1511_s25 = scalar_lea.hbm %s2003_s22, %s1994_s18  ;;  %s1515_s13 = scalar_lea.hbm %s2057_s8, 3200 }
 0x2b7   : > { %p1512_p2 = scmp.ne.s32.totalorder %s2003_s22, %s1511_s25  ;;  %p1516_p7 = scmp.lt.s32.totalorder %s2003_s22, %s2057_s8 }
 0x2b8   : > { %p1517_p6 = scmp.lt.s32.totalorder %s1515_s13, %s1511_s25 }
 0x2b9   : > { %p1513_p3 = pnand %p1512_p2, %p1145_p9 }
 0x2ba   : > { %p1518_p8 = por %p1517_p6, %p1516_p7 }
 0x2bb   : > { %p1514_p4 = pneg %p1513_p3 }
 0x2bd   : > { %p1519_p5 = pnand %p1518_p8, %p1514_p4 }
 0x2bf   : > { %1522 = shalt.err (!%p1519_p5)
}
 0x2c0   : > { %s1567_s21 = smov 128   ;;  %s1568_s16 = smov 8  }
 0x2c1   : > { %1046 = dma.vmem_to_hbm [thread:$0]  (%p1145_p9), %s2006_s26, %s1994_s18, %s2003_s22, %s1989_s11, %s1567_s21, %s1567_s21, %s1568_s16  }
 0x2c2 PF: > { %p1433_p10 = scmp.ge.s32.totalorder %s1561_s10, 2  ;;  %s1055_s23 = sand.u32 1, %s1549_s29  }
 0x2c3   : > { %p2061_p11 = scmp.ne.s32.totalorder %s2059_s17, 0  ;;  %s1056_s14 = scalar_lea.sflag [#allocation5], %s1055_s23 }
 0x2c5   : > { %p1428_p12 = pnand %p1433_p10, %p2061_p11 }
 0x2c7   : > { %p1429_p13 = pneg %p1428_p12 }
 0x2c9   : > { %1544 = dma.done.wait (%p1429_p13), %s1056_s14, 2048  }
 0x2ca   : > { %1546 = vsyncadd (%p1429_p13), %s1056_s14, 4294965248  ;;  %p20_p0 = scmp.ge.s32.totalorder %s1642_s12, 4   ;;  %s2062_s29 = smov %s1553_s30 }
 0x2cb   : > { %s2063_s30 = smov %s1557_s9  ;;  %s2064_s9 = smov %s1653_s15 }
 0x2cc   : > { %s2065_s10 = smov %s1642_s12  ;;  %22 = sbr.rel (!%p20_p0) target bundleno = 6 (0x6), region = 92 }
 0x2d1   :  { %1061 = vsyncpa [#allocation4], 1 }
 0x2d2   :  { %1063 = vsyncpa [#allocation4 + $0x1], 1 }
 0x2d3   :  { %1064 = vsyncpa [#allocation5], 1 }
 0x2d4   :  { %1066 = vsyncpa [#allocation5 + $0x1], 1 }

</bundles_post_ra>
